<compile_context>
chip_gen: v7x
topology: tpu7x:2x2x1
jax: 0.10.0
libtpu: 0.0.40
codegen_flags: <defaults>
</compile_context>

<pallas_src>
import functools

import numpy as np
import jax
import jax.numpy as jnp
from jax.experimental import pallas as pl
from jax.experimental.pallas import tpu as pltpu

EPS = 1e-5
NEG_SLOPE = 0.01


def _rup(x, m):
    return (x + m - 1) // m * m


def _vmem_tile_bytes(rows, cols, itemsize):
    # Conservative VMEM footprint of a (rows, cols) buffer after (8, 128) tiling.
    return _rup(max(rows, 1), 8) * _rup(max(cols, 1), 128) * itemsize


def _tpu_vmem_capacity_bytes():
    try:
        return int(pltpu.get_tpu_info().vmem_capacity_bytes)
    except Exception:
        return 64 * 1024 * 1024  # v7x per-TensorCore VMEM (smallest of v5e/v6e/v7x)


def _auto_tile_n(i, h_pad, o_pad):
    """Largest batch tile (rows) that keeps the pipelined working set well inside VMEM."""
    budget = min(_tpu_vmem_capacity_bytes(), 128 * 1024 * 1024) // 4
    per_row = (
        2 * _rup(i, 128) * 2      # x tile, bf16, double-buffered
        + 2 * o_pad * 4           # out tile, f32, double-buffered
        + 6 * h_pad * 4           # compiler-managed f32 intermediates (h1/a1/h2/a2, casts)
    )
    tile = budget // max(per_row, 1)
    return max(128, min(1024, (tile // 16) * 16))


# ---------------------------------------------------------------------------
# Kernels
# ---------------------------------------------------------------------------

def _temlp_single_kernel(x_ref, w1_ref, w2_ref, w3_ref, vecs_ref, o_ref,
                         *, h_pad, o_pad, neg_slope, eps):
    """Whole batch resident in VMEM (small N). No padding of the batch -> no masking."""
    n = x_ref.shape[0]
    inv_n = 1.0 / float(n)

    g1 = vecs_ref[0:1, :h_pad]
    be1 = vecs_ref[1:2, :h_pad]
    g2 = vecs_ref[2:3, :h_pad]
    be2 = vecs_ref[3:4, :h_pad]
    b3 = vecs_ref[4:5, :o_pad]

    def bn_lrelu(h, g, be):
        # Training-mode BatchNorm1d (biased variance over the batch) + LeakyReLU, in f32.
        mean = jnp.sum(h, axis=0, keepdims=True) * inv_n
        var = jnp.maximum(jnp.sum(h * h, axis=0, keepdims=True) * inv_n - mean * mean, 0.0)
        y = (h - mean) * (jax.lax.rsqrt(var + eps) * g) + be
        return jnp.where(y >= 0, y, neg_slope * y)

    x = x_ref[...].astype(jnp.bfloat16)
    h = jnp.dot(x, w1_ref[...], preferred_element_type=jnp.float32)
    h = bn_lrelu(h, g1, be1)
    h = jnp.dot(h.astype(jnp.bfloat16), w2_ref[...], preferred_element_type=jnp.float32)
    h = bn_lrelu(h, g2, be2)
    o_ref[...] = (
        jnp.dot(h.astype(jnp.bfloat16), w3_ref[...], preferred_element_type=jnp.float32) + b3
    ).astype(o_ref.dtype)


def _temlp_grid_kernel(x_ref, w1_ref, w2_ref, w3_ref, vecs_ref, o_ref,
                       s1_ref, q1_ref, s2_ref, q2_ref,
                       *, n_real, tile_n, h_pad, o_pad, has_pad, neg_slope, eps):
    """Batch-tiled 3-phase kernel (cross-tile BatchNorm via VMEM accumulators)."""
    p = pl.program_id(0)   # phase: 0 = BN1 stats, 1 = BN2 stats, 2 = normalize + emit
    t = pl.program_id(1)   # batch tile
    inv_n = 1.0 / float(n_real)

    g1 = vecs_ref[0:1, :h_pad]
    be1 = vecs_ref[1:2, :h_pad]
    g2 = vecs_ref[2:3, :h_pad]
    be2 = vecs_ref[3:4, :h_pad]
    b3 = vecs_ref[4:5, :o_pad]

    def bn_lrelu(h, s_ref, q_ref, g, be):
        # Training-mode BatchNorm1d from the accumulated batch sums (biased var) + LeakyReLU.
        mean = s_ref[...] * inv_n
        var = jnp.maximum(q_ref[...] * inv_n - mean * mean, 0.0)
        y = (h - mean) * (jax.lax.rsqrt(var + eps) * g) + be
        return jnp.where(y >= 0, y, neg_slope * y)

    @pl.when(jnp.logical_and(p == 0, t == 0))
    def _init():
        s1_ref[...] = jnp.zeros_like(s1_ref)
        q1_ref[...] = jnp.zeros_like(q1_ref)
        s2_ref[...] = jnp.zeros_like(s2_ref)
        q2_ref[...] = jnp.zeros_like(q2_ref)

    # Layer-1 pre-activation (bias folded out by the BN mean subtraction). Recomputed every
    # phase: 3x recompute of these small matmuls beats spilling (N, H) intermediates to HBM.
    h1 = jnp.dot(x_ref[...], w1_ref[...], preferred_element_type=jnp.float32)

    def layer2_pre(mask_padded_rows):
        a1 = bn_lrelu(h1, s1_ref, q1_ref, g1, be1)
        if mask_padded_rows:
            # Zero the zero-padded batch rows so they cannot contaminate BN2's statistics
            # (only needed after the first BN; h1 of padded rows is already exactly 0).
            rows = t * tile_n + jax.lax.broadcasted_iota(jnp.int32, (tile_n, 1), 0)
            a1 = jnp.where(rows < n_real, a1, 0.0)
        return jnp.dot(a1.astype(jnp.bfloat16), w2_ref[...],
                       preferred_element_type=jnp.float32)

    @pl.when(p == 0)
    def _phase0():
        s1_ref[...] += jnp.sum(h1, axis=0, keepdims=True)
        q1_ref[...] += jnp.sum(h1 * h1, axis=0, keepdims=True)

    @pl.when(p == 1)
    def _phase1():
        h2 = layer2_pre(mask_padded_rows=has_pad)
        s2_ref[...] += jnp.sum(h2, axis=0, keepdims=True)
        q2_ref[...] += jnp.sum(h2 * h2, axis=0, keepdims=True)

    @pl.when(p == 2)
    def _phase2():
        # No row masking here: padded output rows are sliced off by the wrapper.
        a2 = bn_lrelu(layer2_pre(mask_padded_rows=False), s2_ref, q2_ref, g2, be2)
        o_ref[...] = (
            jnp.dot(a2.astype(jnp.bfloat16), w3_ref[...], preferred_element_type=jnp.float32)
            + b3
        ).astype(o_ref.dtype)


# ---------------------------------------------------------------------------
# Wrappers
# ---------------------------------------------------------------------------

def temlp_prepare(params):
    """One-time parameter prep (hoisted out of the forward): pad the output-lane dims (H, O)
    to 128, cast MXU operands to bf16, and pack the per-feature vectors (g1, be1, g2, be2, b3)
    into a single (8, F) f32 tile -> one DMA instead of 5+. b1/b2 are dropped: a per-feature
    constant added before training-mode BatchNorm is cancelled by the batch-mean subtraction."""
    (w1, b1, g1, be1, w2, b2, g2, be2, w3, b3) = params
    del b1, b2
    i, h = w1.shape
    o = w3.shape[1]
    h_pad, o_pad = _rup(h, 128), _rup(o, 128)
    f = max(h_pad, o_pad)

    def row(v, width):
        v = jnp.asarray(v, jnp.float32).reshape(1, -1)
        return jnp.pad(v, ((0, 0), (0, width - v.shape[1])))

    w1_p = jnp.pad(w1, ((0, 0), (0, h_pad - h))).astype(jnp.bfloat16)  # K (=I) left unpadded
    w2_p = jnp.pad(w2, ((0, h_pad - h), (0, h_pad - h))).astype(jnp.bfloat16)
    w3_p = jnp.pad(w3, ((0, h_pad - h), (0, o_pad - o))).astype(jnp.bfloat16)
    vecs = jnp.concatenate(
        [row(g1, f), row(be1, f), row(g2, f), row(be2, f), row(b3, f),
         jnp.zeros((3, f), jnp.float32)],
        axis=0,
    )
    return dict(w1=w1_p, w2=w2_p, w3=w3_p, vecs=vecs,
                dims=(int(i), int(h), int(o), int(h_pad), int(o_pad), int(f)))


def _forward_single(x, w1_p, w2_p, w3_p, vecs, dims, out_dtype):
    (i, h, o, h_pad, o_pad, f) = dims
    n = x.shape[0]

    vmem_limit = (
        _vmem_tile_bytes(n, i, 4)
        + _vmem_tile_bytes(i, h_pad, 2) + _vmem_tile_bytes(h_pad, h_pad, 2)
        + _vmem_tile_bytes(h_pad, o_pad, 2) + _vmem_tile_bytes(8, f, 4)
        + _vmem_tile_bytes(n, o_pad, 4)
        + 6 * _vmem_tile_bytes(n, h_pad, 4)   # compiler-managed f32 intermediates
        + (16 << 20)                          # regalloc / pipeline headroom
    )
    cost = pl.CostEstimate(
        flops=2 * n * (i * h + h * h + h * o),
        transcendentals=4 * h,
        bytes_accessed=(x.size * x.dtype.itemsize + w1_p.nbytes + w2_p.nbytes
                        + w3_p.nbytes + vecs.nbytes + n * o_pad * 4),
    )
    vmem_spec = pl.BlockSpec(memory_space=pltpu.MemorySpace.VMEM)
    kernel = functools.partial(_temlp_single_kernel, h_pad=h_pad, o_pad=o_pad,
                               neg_slope=NEG_SLOPE, eps=EPS)
    return pl.pallas_call(
        kernel,
        out_shape=jax.ShapeDtypeStruct((n, o_pad), out_dtype),
        in_specs=[vmem_spec] * 5,
        out_specs=vmem_spec,
        compiler_params=pltpu.CompilerParams(vmem_limit_bytes=int(vmem_limit)),
        cost_estimate=cost,
    )(x, w1_p, w2_p, w3_p, vecs)


def _forward_tiled(x, w1_p, w2_p, w3_p, vecs, dims, tile_n, out_dtype):
    (i, h, o, h_pad, o_pad, f) = dims
    n = x.shape[0]
    num_tiles = -(-n // tile_n)
    n_pad = num_tiles * tile_n

    # Single wrapper op on x: zero-pad ragged batch rows + cast the MXU LHS to bf16.
    x_p = jnp.pad(x, ((0, n_pad - n), (0, 0))).astype(jnp.bfloat16)

    vmem_limit = (
        2 * _vmem_tile_bytes(tile_n, i, 2)
        + 2 * _vmem_tile_bytes(tile_n, o_pad, 4)
        + 2 * (w1_p.nbytes + w2_p.nbytes + w3_p.nbytes + vecs.nbytes)
        + 4 * _vmem_tile_bytes(1, h_pad, 4)
        + 6 * _vmem_tile_bytes(tile_n, h_pad, 4)
        + (16 << 20)
    )
    cost = pl.CostEstimate(
        flops=2 * n * (3 * i * h + 2 * h * h + h * o),   # 3-phase recompute
        transcendentals=4 * h * num_tiles,
        bytes_accessed=(3 * x_p.nbytes + w1_p.nbytes + w2_p.nbytes + w3_p.nbytes
                        + vecs.nbytes + n_pad * o_pad * 4),
    )
    kernel = functools.partial(
        _temlp_grid_kernel, n_real=n, tile_n=tile_n, h_pad=h_pad, o_pad=o_pad,
        has_pad=(n_pad != n), neg_slope=NEG_SLOPE, eps=EPS)

    grid_spec = pltpu.PrefetchScalarGridSpec(
        num_scalar_prefetch=0,
        grid=(3, num_tiles),
        in_specs=[
            pl.BlockSpec((tile_n, i), lambda p, t: (t, 0)),     # x tile: re-read each phase
            pl.BlockSpec((i, h_pad), lambda p, t: (0, 0)),      # weights: VMEM-resident
            pl.BlockSpec((h_pad, h_pad), lambda p, t: (0, 0)),
            pl.BlockSpec((h_pad, o_pad), lambda p, t: (0, 0)),
            pl.BlockSpec((8, f), lambda p, t: (0, 0)),
        ],
        # Output block index only advances during phase 2 (p // 2 == 1) -> no spurious
        # writebacks while the statistics phases run.
        out_specs=pl.BlockSpec((tile_n, o_pad), lambda p, t: ((p // 2) * t, 0)),
        scratch_shapes=[pltpu.VMEM((1, h_pad), jnp.float32)] * 4,
    )
    return pl.pallas_call(
        kernel,
        out_shape=jax.ShapeDtypeStruct((n_pad, o_pad), out_dtype),
        grid_spec=grid_spec,
        compiler_params=pltpu.CompilerParams(
            dimension_semantics=("arbitrary", "arbitrary"),
            vmem_limit_bytes=int(vmem_limit)),
        cost_estimate=cost,
    )(x_p, w1_p, w2_p, w3_p, vecs)


def temlp_forward(x, prepared, *, tile_n=None, out_dtype=jnp.float32):
    n, i = x.shape
    dims = prepared["dims"]
    assert i == dims[0], (i, dims[0])

    if tile_n is None:
        tile_n = _auto_tile_n(i, dims[3], dims[4])
    tile_n = max(16, (int(tile_n) // 16) * 16)   # bf16 packs 16 sublanes per vreg

    if n <= tile_n:
        out_p = _forward_single(x, prepared["w1"], prepared["w2"], prepared["w3"],
                                prepared["vecs"], dims, out_dtype)
    else:
        out_p = _forward_tiled(x, prepared["w1"], prepared["w2"], prepared["w3"],
                               prepared["vecs"], dims, tile_n, out_dtype)
    # NOTE: a consumer that accepts the lane-padded (N, o_pad) slab (and/or bf16 out_dtype)
    # can skip this slice to cut output writeback bandwidth further.
    return out_p[:n, :dims[2]]


# ---------------------------------------------------------------------------
# Reference + init
# ---------------------------------------------------------------------------

def init_params(key, i, h, o):
    """Deterministic init mimicking PyTorch defaults:
    Linear: U(-1/sqrt(fan_in), 1/sqrt(fan_in)) for W and b; BN: gamma=1, beta=0."""
    ks = jax.random.split(key, 6)

    def linear(kw, kb, fan_in, fan_out):
        bound = 1.0 / np.sqrt(fan_in)
        w = jax.random.uniform(kw, (fan_in, fan_out), jnp.float32, -bound, bound)
        b = jax.random.uniform(kb, (1, fan_out), jnp.float32, -bound, bound)
        return w, b

    w1, b1 = linear(ks[0], ks[1], i, h)
    w2, b2 = linear(ks[2], ks[3], h, h)
    w3, b3 = linear(ks[4], ks[5], h, o)
    g1 = jnp.ones((1, h), jnp.float32)
    be1 = jnp.zeros((1, h), jnp.float32)
    g2 = jnp.ones((1, h), jnp.float32)
    be2 = jnp.zeros((1, h), jnp.float32)
    return (w1, b1, g1, be1, w2, b2, g2, be2, w3, b3)


def _leaky_relu(x):
    return jnp.where(x >= 0, x, NEG_SLOPE * x)


def _batchnorm_train_ref(x, gamma, beta):
    mean = jnp.mean(x, axis=0, keepdims=True)
    var = jnp.mean((x - mean) * (x - mean), axis=0, keepdims=True)
    return (x - mean) * jax.lax.rsqrt(var + EPS) * gamma + beta


def temlp_reference(x, params):
    """Pure-f32 reference matching the PyTorch module in training mode."""
    (w1, b1, g1, be1, w2, b2, g2, be2, w3, b3) = params
    h = x @ w1 + b1
    h = _leaky_relu(_batchnorm_train_ref(h, g1, be1))
    h = h @ w2 + b2
    h = _leaky_relu(_batchnorm_train_ref(h, g2, be2))
    return h @ w3 + b3


if __name__ == "__main__":
    I, H, O = 16, 32, 8
    key = jax.random.PRNGKey(0)
    kx1, kx2, kp = jax.random.split(key, 3)
    params = init_params(kp, I, H, O)
    prepared = temlp_prepare(params)   # one-time weight prep (hoisted out of the forward)

    # Small batch -> gridless single-tile kernel (x passed untouched to the kernel).
    x_small = jax.random.normal(kx1, (8, I), jnp.float32)
    out_small = jax.block_until_ready(temlp_forward(x_small, prepared))
    ref_small = temlp_reference(x_small, params)
    assert out_small.shape == (8, O), out_small.shape
    # bf16 MXU inputs (f32 accumulation / BN math) -> loosened tolerance vs. the f32 reference.
    np.testing.assert_allclose(np.asarray(out_small), np.asarray(ref_small),
                               rtol=5e-2, atol=7.5e-2)

    # Larger, ragged batch with a forced small tile -> exercises the 3-phase batch-tiled
    # kernel (cross-tile BatchNorm stats + padded-row masking).
    x_big = jax.random.normal(kx2, (200, I), jnp.float32)
    out_big = jax.block_until_ready(temlp_forward(x_big, prepared, tile_n=64))
    ref_big = temlp_reference(x_big, params)
    assert out_big.shape == (200, O), out_big.shape
    np.testing.assert_allclose(np.asarray(out_big), np.asarray(ref_big),
                               rtol=5e-2, atol=7.5e-2)

    print("KERNEL_OK")
</pallas_src>

<mosaic_0001>
module attributes {stable_mosaic.version = 11 : i64} {
  func.func @_temlp_single_kernel(%arg0: memref<8x16xf32, #tpu.memory_space<vmem>>, %arg1: memref<16x128xbf16, #tpu.memory_space<vmem>>, %arg2: memref<128x128xbf16, #tpu.memory_space<vmem>>, %arg3: memref<128x128xbf16, #tpu.memory_space<vmem>>, %arg4: memref<8x128xf32, #tpu.memory_space<vmem>>, %arg5: memref<8x128xf32, #tpu.memory_space<vmem>>) attributes {dimension_semantics = [], scalar_prefetch = 0 : i64, scratch_operands = 0 : i64, tpu.core_type = #tpu.core_type<tc>} {
    %c0 = arith.constant 0 : index
    %c0_0 = arith.constant 0 : index
    %0 = vector.load %arg4[%c0, %c0_0] : memref<8x128xf32, #tpu.memory_space<vmem>>, vector<1x128xf32>
    %c1 = arith.constant 1 : index
    %c0_1 = arith.constant 0 : index
    %1 = vector.load %arg4[%c1, %c0_1] : memref<8x128xf32, #tpu.memory_space<vmem>>, vector<1x128xf32>
    %c2 = arith.constant 2 : index
    %c0_2 = arith.constant 0 : index
    %2 = vector.load %arg4[%c2, %c0_2] : memref<8x128xf32, #tpu.memory_space<vmem>>, vector<1x128xf32>
    %c3 = arith.constant 3 : index
    %c0_3 = arith.constant 0 : index
    %3 = vector.load %arg4[%c3, %c0_3] : memref<8x128xf32, #tpu.memory_space<vmem>>, vector<1x128xf32>
    %c4 = arith.constant 4 : index
    %c0_4 = arith.constant 0 : index
    %4 = vector.load %arg4[%c4, %c0_4] : memref<8x128xf32, #tpu.memory_space<vmem>>, vector<1x128xf32>
    %c0_5 = arith.constant 0 : index
    %c0_6 = arith.constant 0 : index
    %5 = vector.load %arg0[%c0_5, %c0_6] : memref<8x16xf32, #tpu.memory_space<vmem>>, vector<8x16xf32>
    %6 = arith.truncf %5 : vector<8x16xf32> to vector<8x16xbf16>
    %c0_7 = arith.constant 0 : index
    %c0_8 = arith.constant 0 : index
    %7 = vector.load %arg1[%c0_7, %c0_8] : memref<16x128xbf16, #tpu.memory_space<vmem>>, vector<16x128xbf16>
    %cst = arith.constant dense<0.000000e+00> : vector<8x128xf32>
    %8 = tpu.matmul %6, %7, %cst {dimension_numbers = #tpu.dot_dimension_numbers<[1], [0], [0], [1], [0, 0, 1, 1], [], []>} : vector<8x16xbf16>, vector<16x128xbf16>, vector<8x128xf32> -> vector<8x128xf32>
    %cst_9 = arith.constant dense<0.000000e+00> : vector<128xf32>
    %9 = vector.multi_reduction <add>, %8, %cst_9 [0] : vector<8x128xf32> to vector<128xf32>
    %10 = vector.shape_cast %9 : vector<128xf32> to vector<1x128xf32>
    %cst_10 = arith.constant 1.250000e-01 : f32
    %11 = vector.broadcast %cst_10 : f32 to vector<1x128xf32>
    %12 = arith.mulf %10, %11 : vector<1x128xf32>
    %13 = arith.mulf %8, %8 : vector<8x128xf32>
    %cst_11 = arith.constant dense<0.000000e+00> : vector<128xf32>
    %14 = vector.multi_reduction <add>, %13, %cst_11 [0] : vector<8x128xf32> to vector<128xf32>
    %15 = vector.shape_cast %14 : vector<128xf32> to vector<1x128xf32>
    %cst_12 = arith.constant 1.250000e-01 : f32
    %16 = vector.broadcast %cst_12 : f32 to vector<1x128xf32>
    %17 = arith.mulf %15, %16 : vector<1x128xf32>
    %18 = arith.mulf %12, %12 : vector<1x128xf32>
    %19 = arith.subf %17, %18 : vector<1x128xf32>
    %cst_13 = arith.constant 0.000000e+00 : f32
    %20 = vector.broadcast %cst_13 : f32 to vector<1x128xf32>
    %21 = arith.maximumf %19, %20 : vector<1x128xf32>
    %22 = vector.broadcast %12 : vector<1x128xf32> to vector<8x128xf32>
    %23 = arith.subf %8, %22 : vector<8x128xf32>
    %cst_14 = arith.constant 9.99999974E-6 : f32
    %24 = vector.broadcast %cst_14 : f32 to vector<1x128xf32>
    %25 = arith.addf %21, %24 : vector<1x128xf32>
    %26 = math.rsqrt %25 : vector<1x128xf32>
    %27 = arith.mulf %26, %0 : vector<1x128xf32>
    %28 = vector.broadcast %27 : vector<1x128xf32> to vector<8x128xf32>
    %29 = arith.mulf %23, %28 : vector<8x128xf32>
    %30 = vector.broadcast %1 : vector<1x128xf32> to vector<8x128xf32>
    %31 = arith.addf %29, %30 : vector<8x128xf32>
    %cst_15 = arith.constant 0.000000e+00 : f32
    %32 = vector.broadcast %cst_15 : f32 to vector<8x128xf32>
    %33 = arith.cmpf oge, %31, %32 : vector<8x128xf32>
    %cst_16 = arith.constant 0.00999999977 : f32
    %34 = vector.broadcast %cst_16 : f32 to vector<8x128xf32>
    %35 = arith.mulf %34, %31 : vector<8x128xf32>
    %36 = arith.select %33, %31, %35 : vector<8x128xi1>, vector<8x128xf32>
    %37 = arith.truncf %36 : vector<8x128xf32> to vector<8x128xbf16>
    %c0_17 = arith.constant 0 : index
    %c0_18 = arith.constant 0 : index
    %38 = vector.load %arg2[%c0_17, %c0_18] : memref<128x128xbf16, #tpu.memory_space<vmem>>, vector<128x128xbf16>
    %cst_19 = arith.constant dense<0.000000e+00> : vector<8x128xf32>
    %39 = tpu.matmul %37, %38, %cst_19 {dimension_numbers = #tpu.dot_dimension_numbers<[1], [0], [0], [1], [0, 0, 1, 1], [], []>} : vector<8x128xbf16>, vector<128x128xbf16>, vector<8x128xf32> -> vector<8x128xf32>
    %cst_20 = arith.constant dense<0.000000e+00> : vector<128xf32>
    %40 = vector.multi_reduction <add>, %39, %cst_20 [0] : vector<8x128xf32> to vector<128xf32>
    %41 = vector.shape_cast %40 : vector<128xf32> to vector<1x128xf32>
    %cst_21 = arith.constant 1.250000e-01 : f32
    %42 = vector.broadcast %cst_21 : f32 to vector<1x128xf32>
    %43 = arith.mulf %41, %42 : vector<1x128xf32>
    %44 = arith.mulf %39, %39 : vector<8x128xf32>
    %cst_22 = arith.constant dense<0.000000e+00> : vector<128xf32>
    %45 = vector.multi_reduction <add>, %44, %cst_22 [0] : vector<8x128xf32> to vector<128xf32>
    %46 = vector.shape_cast %45 : vector<128xf32> to vector<1x128xf32>
    %cst_23 = arith.constant 1.250000e-01 : f32
    %47 = vector.broadcast %cst_23 : f32 to vector<1x128xf32>
    %48 = arith.mulf %46, %47 : vector<1x128xf32>
    %49 = arith.mulf %43, %43 : vector<1x128xf32>
    %50 = arith.subf %48, %49 : vector<1x128xf32>
    %cst_24 = arith.constant 0.000000e+00 : f32
    %51 = vector.broadcast %cst_24 : f32 to vector<1x128xf32>
    %52 = arith.maximumf %50, %51 : vector<1x128xf32>
    %53 = vector.broadcast %43 : vector<1x128xf32> to vector<8x128xf32>
    %54 = arith.subf %39, %53 : vector<8x128xf32>
    %cst_25 = arith.constant 9.99999974E-6 : f32
    %55 = vector.broadcast %cst_25 : f32 to vector<1x128xf32>
    %56 = arith.addf %52, %55 : vector<1x128xf32>
    %57 = math.rsqrt %56 : vector<1x128xf32>
    %58 = arith.mulf %57, %2 : vector<1x128xf32>
    %59 = vector.broadcast %58 : vector<1x128xf32> to vector<8x128xf32>
    %60 = arith.mulf %54, %59 : vector<8x128xf32>
    %61 = vector.broadcast %3 : vector<1x128xf32> to vector<8x128xf32>
    %62 = arith.addf %60, %61 : vector<8x128xf32>
    %cst_26 = arith.constant 0.000000e+00 : f32
    %63 = vector.broadcast %cst_26 : f32 to vector<8x128xf32>
    %64 = arith.cmpf oge, %62, %63 : vector<8x128xf32>
    %cst_27 = arith.constant 0.00999999977 : f32
    %65 = vector.broadcast %cst_27 : f32 to vector<8x128xf32>
    %66 = arith.mulf %65, %62 : vector<8x128xf32>
    %67 = arith.select %64, %62, %66 : vector<8x128xi1>, vector<8x128xf32>
    %68 = arith.truncf %67 : vector<8x128xf32> to vector<8x128xbf16>
    %c0_28 = arith.constant 0 : index
    %c0_29 = arith.constant 0 : index
    %69 = vector.load %arg3[%c0_28, %c0_29] : memref<128x128xbf16, #tpu.memory_space<vmem>>, vector<128x128xbf16>
    %cst_30 = arith.constant dense<0.000000e+00> : vector<8x128xf32>
    %70 = tpu.matmul %68, %69, %cst_30 {dimension_numbers = #tpu.dot_dimension_numbers<[1], [0], [0], [1], [0, 0, 1, 1], [], []>} : vector<8x128xbf16>, vector<128x128xbf16>, vector<8x128xf32> -> vector<8x128xf32>
    %71 = vector.broadcast %4 : vector<1x128xf32> to vector<8x128xf32>
    %72 = arith.addf %70, %71 : vector<8x128xf32>
    %c0_31 = arith.constant 0 : index
    %c0_32 = arith.constant 0 : index
    %73 = vector.load %arg5[%c0_31, %c0_32] : memref<8x128xf32, #tpu.memory_space<vmem>>, vector<8x128xf32>
    tpu.vector_store %arg5[%c0_31, %c0_32], %72 {strides = array<i32>} : memref<8x128xf32, #tpu.memory_space<vmem>>, vector<8x128xf32>,
    return
  }
}

</mosaic_0001>

<bundles_post_ra>
// kernel: tpu_custom_call.1
= control target key start
LH: loop header
LB: loop body
LE: loop exit
PB: predicated region body
PF: predicated region fallthrough
CT: control target
= control target key end

     0   :  { %10 = vsyncpa [#allocation3], 0  ;;  %s821_s0 = inlined_call_operand.hbm [shape: f32[8,16], index: 0, kind: input, shape index: {}]   ;;  %s822_s1 = inlined_call_operand.hbm [shape: bf16[16,128], index: 1, kind: input, shape index: {}]   ;;  %s823_s2 = inlined_call_operand.hbm [shape: bf16[128,128], index: 2, kind: input, shape index: {}]   ;;  %s824_s3 = inlined_call_operand.hbm [shape: bf16[128,128], index: 3, kind: input, shape index: {}]   ;;  %s825_s4 = inlined_call_operand.vmem [shape: f32[8,128], index: 4, kind: input, shape index: {}]   ;;  %s826_s5 = inlined_call_operand.hbm [shape: f32[8,128], index: 5, kind: output, shape index: {}]  }
   0x1   :  { %11 = vsyncpa [#allocation6], 0 }
   0x2   :  { %12 = vsyncpa [#allocation9], 0 }
   0x3   :  { %13 = vsyncpa [#allocation4], 0  ;;  %s671_s18 = smov [#allocation5]   ;;  %s553_s22 = scalar_lea.hbm %s822_s1, 128 }
   0x4   :  { %s29_s19 = sshll.u32 %s671_s18, 4  ;;  %p554_p0 = scmp.ne.s32.totalorder %s822_s1, %s553_s22  ;;  %s30_s19 = int_to_ptr.vmem [resolvable:$true] %s29_s19 }
   0x5   :  { %p557_p1 = scmp.lt.u32.totalorder %s553_s22, %s822_s1 }
   0x7   :  { %p559_p2 = pnand %p557_p1, %p554_p0 }
   0x9   :  { %562 = shalt.err (!%p559_p2)
}
   0xa   :  { %s563_s27 = scalar_lea.vmem %s30_s19, 128  ;;  %p568_p4 = scmp.lt.s32.totalorder %s30_s19, %s30_s19 }
   0xb   :  { %p564_p3 = scmp.ne.s32.totalorder %s30_s19, %s563_s27  ;;  %p569_p5 = scmp.lt.s32.totalorder %s563_s27, %s563_s27 }
   0xd   :  { %p570_p6 = por %p569_p5, %p568_p4 }
   0xf   :  { %p571_p7 = pnand %p570_p6, %p564_p3 }
  0x11   :  { %574 = shalt.err (!%p571_p7)
}
  0x12   :  { %s672_s28 = smov 64   ;;  %s673_s29 = smov 4  }
  0x13   :  { %35 = dma.hbm_to_vmem [thread:$0]  %s822_s1, 128, %s30_s19, [#allocation6], %s672_s28, %s672_s28, %s673_s29  }
  0x14   :  { %s674_s7 = smov [#allocation2]   ;;  %s675_s9 = smov [#allocation7]  }
  0x15   :  { %s20_s8 = sshll.u32 %s674_s7, 4  ;;  %s41_s10 = sshll.u32 %s675_s9, 4  ;;  %s21_s8 = int_to_ptr.vmem [resolvable:$true] %s20_s8  ;;  %s42_s10 = int_to_ptr.vmem [resolvable:$true] %s41_s10 }
  0x16   :  { %s575_s13 = scalar_lea.hbm %s821_s0, 128 }
  0x17   :  { %p576_p8 = scmp.ne.s32.totalorder %s821_s0, %s575_s13  ;;  %p579_p9 = scmp.lt.u32.totalorder %s575_s13, %s821_s0 }
  0x19   :  { %p581_p10 = pnand %p579_p9, %p576_p8 }
  0x1b   :  { %584 = shalt.err (!%p581_p10)
}
  0x1c   :  { %s585_s1 = scalar_lea.vmem %s21_s8, 128  ;;  %p590_p12 = scmp.lt.s32.totalorder %s21_s8, %s21_s8 }
  0x1d   :  { %p586_p11 = scmp.ne.s32.totalorder %s21_s8, %s585_s1  ;;  %p591_p13 = scmp.lt.s32.totalorder %s585_s1, %s585_s1 }
  0x1f   :  { %p592_p0 = por %p591_p13, %p590_p12 }
  0x21   :  { %p593_p1 = pnand %p592_p0, %p586_p11 }
  0x23   :  { %596 = shalt.err (!%p593_p1)
}
  0x24   :  { %23 = dma.hbm_to_vmem [thread:$0]  %s821_s0, 128, %s21_s8, [#allocation3]  }
  0x25   :  { %s597_s22 = scalar_lea.hbm %s823_s2, 1024 }
  0x26   :  { %p598_p2 = scmp.ne.s32.totalorder %s823_s2, %s597_s22  ;;  %p601_p3 = scmp.lt.u32.totalorder %s597_s22, %s823_s2 }
  0x28   :  { %p603_p4 = pnand %p601_p3, %p598_p2 }
  0x2a   :  { %606 = shalt.err (!%p603_p4)
}
  0x2b   :  { %s607_s27 = scalar_lea.vmem %s42_s10, 1024  ;;  %p612_p6 = scmp.lt.s32.totalorder %s42_s10, %s42_s10 }
  0x2c   :  { %p608_p5 = scmp.ne.s32.totalorder %s42_s10, %s607_s27  ;;  %p613_p7 = scmp.lt.s32.totalorder %s607_s27, %s607_s27 }
  0x2e   :  { %p614_p8 = por %p613_p7, %p612_p6 }
  0x30   :  { %p615_p9 = pnand %p614_p8, %p608_p5 }
  0x32   :  { %618 = shalt.err (!%p615_p9)
}
  0x33   :  { %47 = dma.hbm_to_vmem [thread:$0]  %s823_s2, 1024, %s42_s10, [#allocation6], %s672_s28, %s672_s28, %s673_s29  }
  0x34   :  { %s676_s6 = smov [#allocation8]   ;;  %s619_s11 = scalar_lea.hbm %s824_s3, 1024 }
  0x35   :  { %s53_s7 = sshll.u32 %s676_s6, 4  ;;  %p620_p10 = scmp.ne.s32.totalorder %s824_s3, %s619_s11  ;;  %s54_s7 = int_to_ptr.vmem [resolvable:$true] %s53_s7 }
  0x36   :  { %p623_p11 = scmp.lt.u32.totalorder %s619_s11, %s824_s3 }
  0x38   :  { %p625_p12 = pnand %p623_p11, %p620_p10 }
  0x3a   :  { %628 = shalt.err (!%p625_p12)
}
  0x3b   :  { %s629_s16 = scalar_lea.vmem %s54_s7, 1024  ;;  %p634_p0 = scmp.lt.s32.totalorder %s54_s7, %s54_s7 }
  0x3c   :  { %p630_p13 = scmp.ne.s32.totalorder %s54_s7, %s629_s16  ;;  %p635_p1 = scmp.lt.s32.totalorder %s629_s16, %s629_s16 }
  0x3e   :  { %p636_p2 = por %p635_p1, %p634_p0 }
  0x40   :  { %p637_p3 = pnand %p636_p2, %p630_p13 }
  0x42   :  { %640 = shalt.err (!%p637_p3)
}
  0x43   :  { %59 = dma.hbm_to_vmem [thread:$0]  %s824_s3, 1024, %s54_s7, [#allocation9], %s672_s28, %s672_s28, %s673_s29  }
  0x44   :  { %663 = dma.done.wait [#allocation3], 128  }
  0x45   :  { %664 = vsyncadd [#allocation3], 4294967168 }
  0x46   :  { %665 = dma.done.wait [#allocation6], 1152  }
  0x47   :  { %666 = vsyncadd [#allocation6], 4294966144 }
  0x48   :  { %667 = dma.done.wait [#allocation9], 1024  }
  0x49   :  { %668 = vsyncadd [#allocation9], 4294966272  ;;  %v677_v0 = vmov 0.0   ;;  %vm678_vm0 = vmmov 0   ;;  %v532_v1 = vld [vmem:[#allocation5] sm:$0xff]   ;;  %v80_v2 = vld [vmem:[#allocation2] sm:$0xff]  ;;  %v156_v35 = vlaneseq }
  0x4a   :  { %477 = vmatprep.subr.bf16.mxu0 %v677_v0  ;;  %479 = vmatprep.mubr.msk.bf16.mxu0 %vm678_vm0, %v677_v0  ;;  %vm90_vm1 = vcmask 130048   ;;  %v81_v3 = vpack.c.bf16 %v80_v2, %v80_v2  ;;  %v533_v4 = vld [vmem:[#allocation7] sm:$0xff]   ;;  %v534_v5 = vld [vmem:[#allocation7 + $0x8] sm:$0xff]   ;;  %v535_v6 = vld [vmem:[#allocation7 + $0x10] sm:$0xff]   ;;  %s679_s23 = smov [#allocation10]  }
  0x4b   :  { %483 = vmatprep.subr.bf16.mxu1 %v677_v0  ;;  %499 = vmatprep.mubr.msk.bf16.mxu1 %vm678_vm0, %v677_v0  ;;  %v536_v7 = vld [vmem:[#allocation7 + $0x18] sm:$0xff]   ;;  %v537_v8 = vld [vmem:[#allocation7 + $0x20] sm:$0xff]   ;;  %v538_v9 = vld [vmem:[#allocation7 + $0x28] sm:$0xff]   ;;  %v780_v36 = vshrl.u32 %v156_v35, 7  ;;  %s425_s24 = sshll.u32 %s679_s23, 4  ;;  %s426_s24 = int_to_ptr.vmem [resolvable:$true] %s425_s24 }
  0x4c   :  { %478 = vmatpush3.bf16.msra.mxu0 %v532_v1  ;;  %484 = vmatpush3.bf16.msra.mxu1 %v533_v4  ;;  %v539_v10 = vld [vmem:[#allocation7 + $0x30] sm:$0xff]   ;;  %v540_v11 = vld [vmem:[#allocation7 + $0x38] sm:$0xff]   ;;  %v541_v49 = vld [vmem:[#allocation8] sm:$0xff]   ;;  %s641_s25 = scalar_lea.vmem %s426_s24, 128  ;;  %p646_p5 = scmp.lt.s32.totalorder %s426_s24, %s426_s24 }
  0x4d   :  { %503 = vmatprep.subr.bf16.mxu0 %v677_v0  ;;  %485 = vmatprep.subr.bf16.mxu1 %v677_v0  ;;  %v75_v37 = vld [vmem:[%s825_s4] sm:$0x1]  ;;  %v158_v38 = vsub.s32 0, %v780_v36  ;;  %v438_v43 = vld [vmem:[%s825_s4 + $0x1] ss:$0 sm:$0xff]  ;;  %v542_v50 = vld [vmem:[#allocation8 + $0x8] sm:$0xff]   ;;  %p642_p4 = scmp.ne.s32.totalorder %s426_s24, %s641_s25  ;;  %p647_p6 = scmp.lt.s32.totalorder %s641_s25, %s641_s25 }
  0x4e   :  { %v543_v51 = vld [vmem:[#allocation8 + $0x10] sm:$0xff]   ;;  %v544_v52 = vld [vmem:[#allocation8 + $0x18] sm:$0xff]   ;;  %v545_v53 = vld [vmem:[#allocation8 + $0x20] sm:$0xff]  }
  0x4f   :  { %480 = vmatmul.mubr.msk.bf16.vlgmr.msra.gmra.mrb[0].mxu0 %vm90_vm1, %v81_v3  ;;  %v546_v54 = vld [vmem:[#allocation8 + $0x28] sm:$0xff]   ;;  %v547_v55 = vld [vmem:[#allocation8 + $0x30] sm:$0xff]   ;;  %v548_v56 = vld [vmem:[#allocation8 + $0x38] sm:$0xff]   ;;  %p648_p7 = por %p647_p6, %p646_p5 }
  0x50   :  { %519 = vmatprep.mubr.msk.bf16.mxu0 %vm678_vm0, %v677_v0  ;;  %486 = vmatpush3.bf16.msra.mxu1 %v534_v5 }
  0x51   :  { %487 = vmatprep.subr.bf16.mxu1 %v677_v0  ;;  %504 = vmatpush3.bf16.msra.mxu0 %v541_v49  ;;  %p649_p8 = pnand %p648_p7, %p642_p4 }
  0x52   :  { %505 = vmatprep.subr.bf16.mxu0 %v677_v0 }
  0x54   :  { %488 = vmatpush3.bf16.msra.mxu1 %v535_v6 }
  0x55   :  { %489 = vmatprep.subr.bf16.mxu1 %v677_v0  ;;  %506 = vmatpush3.bf16.msra.mxu0 %v542_v50 }
  0x56   :  { %507 = vmatprep.subr.bf16.mxu0 %v677_v0 }
  0x58   :  { %490 = vmatpush3.bf16.msra.mxu1 %v536_v7 }
  0x59   :  { %491 = vmatprep.subr.bf16.mxu1 %v677_v0  ;;  %508 = vmatpush3.bf16.msra.mxu0 %v543_v51 }
  0x5a   :  { %509 = vmatprep.subr.bf16.mxu0 %v677_v0 }
  0x5c   :  { %492 = vmatpush3.bf16.msra.mxu1 %v537_v8 }
  0x5d   :  { %493 = vmatprep.subr.bf16.mxu1 %v677_v0  ;;  %510 = vmatpush3.bf16.msra.mxu0 %v544_v52 }
  0x5e   :  { %511 = vmatprep.subr.bf16.mxu0 %v677_v0 }
  0x60   :  { %494 = vmatpush3.bf16.msra.mxu1 %v538_v9 }
  0x61   :  { %495 = vmatprep.subr.bf16.mxu1 %v677_v0  ;;  %512 = vmatpush3.bf16.msra.mxu0 %v545_v53 }
  0x62   :  { %513 = vmatprep.subr.bf16.mxu0 %v677_v0 }
  0x64   :  { %496 = vmatpush3.bf16.msra.mxu1 %v539_v10 }
  0x65   :  { %497 = vmatprep.subr.bf16.mxu1 %v677_v0  ;;  %514 = vmatpush3.bf16.msra.mxu0 %v546_v54 }
  0x66   :  { %515 = vmatprep.subr.bf16.mxu0 %v677_v0 }
  0x68   :  { %498 = vmatpush3.bf16.msra.mxu1 %v540_v11 }
  0x69   :  { %516 = vmatpush3.bf16.msra.mxu0 %v547_v55 }
  0x6a   :  { %517 = vmatprep.subr.bf16.mxu0 %v677_v0 }
  0x6d   :  { %518 = vmatpush3.bf16.msra.mxu0 %v548_v56 }
 0x122   :  { %v128_v12 = vpop.f32.mrb[0].mxu0 }
 0x123   :  { %v134_v13 = vrot.slane %v128_v12, 4  ;;  %v141_v14 = vmul.f32 %v128_v12, %v128_v12  ;;  %v481_v15 = vpop.f32.mrb[1].mxu0 }
 0x124   :  { %v131_v16 = vpop.f32.mrb[2].mxu0 }
 0x125   :  { %v135_v17 = vadd.f32 %v134_v13, %v128_v12  ;;  %v142_v18 = vrot.slane %v141_v14, 4  ;;  %v482_v19 = vpop.f32.mrb[3].mxu0  ;;  %v77_v16 = vld [vmem:[%s825_s4 + $0x2] sm:$0x1] }
 0x127   :  { %v136_v20 = vrot.slane %v135_v17, 2  ;;  %v143_v21 = vadd.f32 %v142_v18, %v141_v14 }
 0x129   :  { %v137_v22 = vadd.f32 %v136_v20, %v135_v17  ;;  %v144_v23 = vrot.slane %v143_v21, 2 }
 0x12b   :  { %v138_v24 = vrot.slane %v137_v22, 1  ;;  %v145_v25 = vadd.f32 %v144_v23, %v143_v21  ;;  %v447_v21 = vld [vmem:[%s825_s4 + $0x3] ss:$0 sm:$0xff] }
 0x12d   :  { %v139_v26 = vadd.f32 %v138_v24, %v137_v22  ;;  %v146_v27 = vrot.slane %v145_v25, 1 }
 0x12f   :  { %v140_v28 = vmul.f32 0.125, %v139_v26  ;;  %v147_v29 = vadd.f32 %v146_v27, %v145_v25  ;;  %v448_v27 = vld [vmem:[%s825_s4 + $0x4] ss:$0 sm:$0xff] }
 0x131   :  { %v148_v30 = vmul.f32 0.125, %v147_v29  ;;  %v149_v31 = vmul.f32 %v140_v28, %v140_v28  ;;  %v152_v41 = vsub.f32 %v128_v12, %v140_v28 }
 0x133   :  { %v150_v32 = vsub.f32 %v148_v30, %v149_v31 }
 0x135   :  { %v151_v33 = vmax.f32 %v150_v32, 0.0 }
 0x137   :  { %v153_v34 = vadd.f32 1e-05, %v151_v33 }
 0x139   :  { %549 = vrsqrt.f32 %v153_v34 }
 0x143   :  { %v550_v39 = vpop.eup %549 }
 0x144   :  { %v155_v40 = vmul.f32 %v550_v39, %v75_v37 }
 0x146   :  { %v159_v42 = vrot.slane %v155_v40, %v158_v38 }
 0x148   :  { %v160_v44 = vmul.f32 %v159_v42, %v152_v41 }
 0x14a   :  { %v165_v45 = vadd.f32 %v438_v43, %v160_v44 }
 0x14c   :  { %vm166_vm2 = vcmp.ge.f32.partialorder %v165_v45, 0.0  ;;  %v167_v46 = vmul.f32 0.01, %v165_v45 }
 0x14e   :  { %v168_v47 = vsel %vm166_vm2, %v165_v45, %v167_v46 }
 0x14f   :  { %v169_v48 = vpack.c.bf16 %v168_v47, %v168_v47 }
 0x151   :  { %500 = vmatmul.mubr.bf16.vlgmr.msra.gmra.mrb[0].mxu1 %v169_v48 }
 0x224   :  { %v268_v57 = vpop.f32.mrb[0].mxu1 }
 0x225   :  { %v274_v58 = vrot.slane %v268_v57, 4  ;;  %v281_v59 = vmul.f32 %v268_v57, %v268_v57  ;;  %v501_v60 = vpop.f32.mrb[1].mxu1 }
 0x226   :  { %v271_v61 = vpop.f32.mrb[2].mxu1 }
 0x227   :  { %v275_v62 = vadd.f32 %v274_v58, %v268_v57  ;;  %v282_v63 = vrot.slane %v281_v59, 4  ;;  %v502_v1 = vpop.f32.mrb[3].mxu1 }
 0x229   :  { %v276_v2 = vrot.slane %v275_v62, 2  ;;  %v283_v3 = vadd.f32 %v282_v63, %v281_v59 }
 0x22b   :  { %v277_v4 = vadd.f32 %v276_v2, %v275_v62  ;;  %v284_v5 = vrot.slane %v283_v3, 2 }
 0x22d   :  { %v278_v6 = vrot.slane %v277_v4, 1  ;;  %v285_v7 = vadd.f32 %v284_v5, %v283_v3 }
 0x22f   :  { %v279_v8 = vadd.f32 %v278_v6, %v277_v4  ;;  %v286_v9 = vrot.slane %v285_v7, 1 }
 0x231   :  { %v280_v10 = vmul.f32 0.125, %v279_v8  ;;  %v287_v11 = vadd.f32 %v286_v9, %v285_v7 }
 0x233   :  { %v288_v0 = vmul.f32 0.125, %v287_v11  ;;  %v289_v12 = vmul.f32 %v280_v10, %v280_v10  ;;  %v292_v19 = vsub.f32 %v268_v57, %v280_v10 }
 0x235   :  { %v290_v13 = vsub.f32 %v288_v0, %v289_v12 }
 0x237   :  { %v291_v14 = vmax.f32 %v290_v13, 0.0 }
 0x239   :  { %v293_v15 = vadd.f32 1e-05, %v291_v14 }
 0x23b   :  { %551 = vrsqrt.f32 %v293_v15 }
 0x245   :  { %v552_v17 = vpop.eup %551 }
 0x246   :  { %v295_v18 = vmul.f32 %v552_v17, %v77_v16 }
 0x248   :  { %v299_v20 = vrot.slane %v295_v18, %v158_v38 }
 0x24a   :  { %v300_v22 = vmul.f32 %v299_v20, %v292_v19 }
 0x24c   :  { %v305_v23 = vadd.f32 %v447_v21, %v300_v22 }
 0x24e   :  { %vm306_vm3 = vcmp.ge.f32.partialorder %v305_v23, 0.0  ;;  %v307_v24 = vmul.f32 0.01, %v305_v23 }
 0x250   :  { %v308_v25 = vsel %vm306_vm3, %v305_v23, %v307_v24 }
 0x251   :  { %v309_v26 = vpack.c.bf16 %v308_v25, %v308_v25 }
 0x253   :  { %520 = vmatmul.mubr.bf16.vlgmr.msra.gmra.mrb[4].mxu0 %v309_v26 }
 0x326   :  { %v412_v28 = vpop.f32.mrb[4].mxu0 }
 0x327   :  { %v413_v29 = vadd.f32 %v448_v27, %v412_v28  ;;  %v521_v30 = vpop.f32.mrb[5].mxu0 }
 0x328   :  { %v415_v31 = vpop.f32.mrb[6].mxu0 }
 0x329   :  { %418 = vst [vmem:[#allocation10] sm:$0xff] %v413_v29  ;;  %v522_v32 = vpop.f32.mrb[7].mxu0 }
 0x32a   :  { %652 = shalt.err (!%p649_p8)
}
 0x32b   :  { %s653_s4 = scalar_lea.hbm %s826_s5, 128 }
 0x32c   :  { %p654_p9 = scmp.ne.s32.totalorder %s826_s5, %s653_s4  ;;  %p657_p10 = scmp.lt.u32.totalorder %s653_s4, %s826_s5 }
 0x32e   :  { %p659_p11 = pnand %p657_p10, %p654_p9 }
 0x330   :  { %662 = shalt.err (!%p659_p11)
}
 0x331   :  { %428 = dma.vmem_to_hbm [thread:$0]  %s426_s24, 128, %s826_s5, [#allocation4]  }
 0x332   :  { %669 = dma.done.wait [#allocation4], 128  }
 0x333   :  { %670 = vsyncadd [#allocation4], 4294967168 }
 0x334   :  { %432 = vsyncpa [#allocation3], 1 }
 0x335   :  { %433 = vsyncpa [#allocation6], 1 }
 0x336   :  { %434 = vsyncpa [#allocation9], 1 }
 0x337   :  { %435 = vsyncpa [#allocation4], 1 }

</bundles_post_ra>
